<compile_context>
chip_gen: v5e
topology: v5e:2x2
jax: 0.10.0
libtpu: 0.0.40
codegen_flags: <defaults>
</compile_context>

<pallas_src>
import functools

import jax
import jax.numpy as jnp
from jax import lax
from jax.experimental import pallas as pl
from jax.experimental.pallas import tpu as pltpu


def _mha_kernel(q_ref, k_ref, v_ref, wq_ref, wk_ref, wv_ref, bv_ref, o_ref,
                *, num_heads, head_dim):
    # q_ref/k_ref/v_ref : (1, S, D)   current batch element
    # wq_ref/wk_ref/wv_ref : (D, H*E) pre-transposed stacked weights
    #                                 (1/sqrt(E) folded into wq)
    # bv_ref : (1, H*E)
    # o_ref  : (1, S, H*E)
    q = q_ref[0]          # (S, D)
    k = k_ref[0]          # (S, D)
    v = v_ref[0]          # (S, D)

    # Fused, lane-dense projections: (S, D) @ (D, H*E)
    Q = jnp.dot(q, wq_ref[...], preferred_element_type=jnp.float32)            # scaled queries
    K = jnp.dot(k, wk_ref[...], preferred_element_type=jnp.float32)
    V = jnp.dot(v, wv_ref[...], preferred_element_type=jnp.float32) + bv_ref[...]

    s = Q.shape[0]
    row = lax.broadcasted_iota(jnp.int32, (s, s), 0)
    col = lax.broadcasted_iota(jnp.int32, (s, s), 1)
    causal = col <= row
    neg_big = jnp.float32(-1e30)   # finite mask value; exp() underflows to 0 like -inf

    outs = []
    for h in range(num_heads):     # static unroll over heads (per-head attention)
        sl = slice(h * head_dim, (h + 1) * head_dim)
        qh = Q[:, sl]              # (S, E)
        kh = K[:, sl]              # (S, E)
        vh = V[:, sl]              # (S, E)

        # Q @ K^T without an explicit transpose: contract dim 1 of both sides.
        scores = lax.dot_general(qh, kh, (((1,), (1,)), ((), ())),
                                 preferred_element_type=jnp.float32)            # (S, S)
        scores = jnp.where(causal, scores, neg_big)

        m = jnp.max(scores, axis=-1, keepdims=True)
        p = jnp.exp(scores - m)
        l = jnp.sum(p, axis=-1, keepdims=True)
        p = p * pl.reciprocal(l, approx=False)

        outs.append(jnp.dot(p, vh, preferred_element_type=jnp.float32))         # (S, E)

    # One full-lane store of all heads' columns: (S, H*E)
    o_ref[0] = jnp.concatenate(outs, axis=-1).astype(o_ref.dtype)


def masked_multi_head_attention(query, key, value, wq, wk, wv, bv):
    """query/key/value: (B, S, D); wq/wk/wv: (H, E, D); bv: (H, 1, E).
    Returns (B, S, H*E) — identical layout to torch.cat of per-head outputs."""
    B, S, D = query.shape
    H, E, _ = wq.shape
    HE = H * E

    # PyTorch Linear computes x @ W^T (W is (E, D)).  Stack heads along output
    # columns and pre-transpose to (D, H*E); fold the attention scale into wq.
    scale = jnp.float32(E) ** jnp.float32(-0.5)
    wq_t = jnp.transpose(wq, (2, 0, 1)).reshape(D, HE) * scale
    wk_t = jnp.transpose(wk, (2, 0, 1)).reshape(D, HE)
    wv_t = jnp.transpose(wv, (2, 0, 1)).reshape(D, HE)
    bv_f = bv.reshape(1, HE)

    kernel = functools.partial(_mha_kernel, num_heads=H, head_dim=E)

    qkv_spec = pl.BlockSpec((1, S, D), lambda b: (b, 0, 0))
    w_spec = pl.BlockSpec((D, HE), lambda b: (0, 0))
    bv_spec = pl.BlockSpec((1, HE), lambda b: (0, 0))
    out_spec = pl.BlockSpec((1, S, HE), lambda b: (b, 0, 0))

    return pl.pallas_call(
        kernel,
        out_shape=jax.ShapeDtypeStruct((B, S, HE), jnp.float32),
        grid_spec=pltpu.PrefetchScalarGridSpec(
            num_scalar_prefetch=0,
            grid=(B,),
            in_specs=[qkv_spec, qkv_spec, qkv_spec, w_spec, w_spec, w_spec, bv_spec],
            out_specs=out_spec,
        ),
        compiler_params=pltpu.CompilerParams(
            dimension_semantics=("parallel",),
        ),
    )(query, key, value, wq_t, wk_t, wv_t, bv_f)


def _reference(query, key, value, wq, wk, wv, bv):
    """Pure-JAX reference mirroring the PyTorch forward exactly."""
    B, S, D = query.shape
    H, E, _ = wq.shape
    outs = []
    for h in range(H):
        q = query @ wq[h].T
        k = key @ wk[h].T
        v = value @ wv[h].T + bv[h, 0]
        scale = E ** -0.5
        sc = jnp.einsum("bse,bte->bst", q, k) * scale
        mask = jnp.tril(jnp.ones((S, S), dtype=bool))
        sc = jnp.where(mask, sc, -jnp.inf)
        p = jax.nn.softmax(sc, axis=-1)
        outs.append(jnp.einsum("bst,bte->bse", p, v))
    return jnp.concatenate(outs, axis=-1)


if __name__ == "__main__":
    # Small config consistent with the module: num_heads=4, d_model=128 -> head_size=32
    B, S, D, H = 2, 8, 128, 4
    E = D // H

    key0 = jax.random.PRNGKey(0)
    k_q, k_k, k_v, k_wq, k_wk, k_wv, k_bv = jax.random.split(key0, 7)

    query = jax.random.normal(k_q, (B, S, D), dtype=jnp.float32)
    key_in = jax.random.normal(k_k, (B, S, D), dtype=jnp.float32)
    value = jax.random.normal(k_v, (B, S, D), dtype=jnp.float32)

    # Deterministic parameter init (PyTorch-Linear-style uniform bound 1/sqrt(fan_in))
    bound_w = 1.0 / (D ** 0.5)
    wq = jax.random.uniform(k_wq, (H, E, D), jnp.float32, -bound_w, bound_w)
    wk = jax.random.uniform(k_wk, (H, E, D), jnp.float32, -bound_w, bound_w)
    wv = jax.random.uniform(k_wv, (H, E, D), jnp.float32, -bound_w, bound_w)
    bv = jax.random.uniform(k_bv, (H, 1, E), jnp.float32, -bound_w, bound_w)

    out = masked_multi_head_attention(query, key_in, value, wq, wk, wv, bv)
    out = jax.block_until_ready(out)

    ref = _reference(query, key_in, value, wq, wk, wv, bv)
    assert out.shape == (B, S, H * E), out.shape
    assert jnp.allclose(out, ref, atol=1e-4, rtol=1e-4), float(jnp.max(jnp.abs(out - ref)))

    print("KERNEL_OK")
</pallas_src>

<mosaic_0001>
module attributes {stable_mosaic.version = 11 : i64} {
  func.func @_mha_kernel(%arg0: i32, %arg1: memref<1x8x128xf32, #tpu.memory_space<vmem>>, %arg2: memref<1x8x128xf32, #tpu.memory_space<vmem>>, %arg3: memref<1x8x128xf32, #tpu.memory_space<vmem>>, %arg4: memref<128x128xf32, #tpu.memory_space<vmem>>, %arg5: memref<128x128xf32, #tpu.memory_space<vmem>>, %arg6: memref<128x128xf32, #tpu.memory_space<vmem>>, %arg7: memref<1x128xf32, #tpu.memory_space<vmem>>, %arg8: memref<1x8x128xf32, #tpu.memory_space<vmem>>) attributes {dimension_semantics = [#tpu.dimension_semantics<parallel>], iteration_bounds = array<i64: 2>, scalar_prefetch = 0 : i64, scratch_operands = 0 : i64, tpu.core_type = #tpu.core_type<tc>, window_params = [{transform_indices = @transform_0, window_bounds = array<i64: 1, 8, 128>}, {transform_indices = @transform_1, window_bounds = array<i64: 1, 8, 128>}, {transform_indices = @transform_2, window_bounds = array<i64: 1, 8, 128>}, {pipeline_mode = #tpu.pipeline_mode<synchronous>, transform_indices = @transform_3, window_bounds = array<i64: 128, 128>}, {pipeline_mode = #tpu.pipeline_mode<synchronous>, transform_indices = @transform_4, window_bounds = array<i64: 128, 128>}, {pipeline_mode = #tpu.pipeline_mode<synchronous>, transform_indices = @transform_5, window_bounds = array<i64: 128, 128>}, {pipeline_mode = #tpu.pipeline_mode<synchronous>, transform_indices = @transform_6, window_bounds = array<i64: 1, 128>}, {transform_indices = @transform_7, window_bounds = array<i64: 1, 8, 128>}]} {
    %c0 = arith.constant 0 : index
    %c0_0 = arith.constant 0 : index
    %c0_1 = arith.constant 0 : index
    %0 = vector.load %arg1[%c0, %c0_0, %c0_1] : memref<1x8x128xf32, #tpu.memory_space<vmem>>, vector<1x8x128xf32>
    %1 = vector.shape_cast %0 : vector<1x8x128xf32> to vector<8x128xf32>
    %c0_2 = arith.constant 0 : index
    %c0_3 = arith.constant 0 : index
    %c0_4 = arith.constant 0 : index
    %2 = vector.load %arg2[%c0_2, %c0_3, %c0_4] : memref<1x8x128xf32, #tpu.memory_space<vmem>>, vector<1x8x128xf32>
    %3 = vector.shape_cast %2 : vector<1x8x128xf32> to vector<8x128xf32>
    %c0_5 = arith.constant 0 : index
    %c0_6 = arith.constant 0 : index
    %c0_7 = arith.constant 0 : index
    %4 = vector.load %arg3[%c0_5, %c0_6, %c0_7] : memref<1x8x128xf32, #tpu.memory_space<vmem>>, vector<1x8x128xf32>
    %5 = vector.shape_cast %4 : vector<1x8x128xf32> to vector<8x128xf32>
    %c0_8 = arith.constant 0 : index
    %c0_9 = arith.constant 0 : index
    %6 = vector.load %arg4[%c0_8, %c0_9] : memref<128x128xf32, #tpu.memory_space<vmem>>, vector<128x128xf32>
    %cst = arith.constant dense<0.000000e+00> : vector<8x128xf32>
    %7 = tpu.matmul %1, %6, %cst {dimension_numbers = #tpu.dot_dimension_numbers<[1], [0], [0], [1], [0, 0, 1, 1], [], []>} : vector<8x128xf32>, vector<128x128xf32>, vector<8x128xf32> -> vector<8x128xf32>
    %c0_10 = arith.constant 0 : index
    %c0_11 = arith.constant 0 : index
    %8 = vector.load %arg5[%c0_10, %c0_11] : memref<128x128xf32, #tpu.memory_space<vmem>>, vector<128x128xf32>
    %cst_12 = arith.constant dense<0.000000e+00> : vector<8x128xf32>
    %9 = tpu.matmul %3, %8, %cst_12 {dimension_numbers = #tpu.dot_dimension_numbers<[1], [0], [0], [1], [0, 0, 1, 1], [], []>} : vector<8x128xf32>, vector<128x128xf32>, vector<8x128xf32> -> vector<8x128xf32>
    %c0_13 = arith.constant 0 : index
    %c0_14 = arith.constant 0 : index
    %10 = vector.load %arg6[%c0_13, %c0_14] : memref<128x128xf32, #tpu.memory_space<vmem>>, vector<128x128xf32>
    %cst_15 = arith.constant dense<0.000000e+00> : vector<8x128xf32>
    %11 = tpu.matmul %5, %10, %cst_15 {dimension_numbers = #tpu.dot_dimension_numbers<[1], [0], [0], [1], [0, 0, 1, 1], [], []>} : vector<8x128xf32>, vector<128x128xf32>, vector<8x128xf32> -> vector<8x128xf32>
    %c0_16 = arith.constant 0 : index
    %c0_17 = arith.constant 0 : index
    %12 = vector.load %arg7[%c0_16, %c0_17] : memref<1x128xf32, #tpu.memory_space<vmem>>, vector<1x128xf32>
    %13 = vector.broadcast %12 : vector<1x128xf32> to vector<8x128xf32>
    %14 = arith.addf %11, %13 : vector<8x128xf32>
    %15 = tpu.iota {dimensions = array<i32: 0>} : vector<8x8xi32>
    %16 = tpu.iota {dimensions = array<i32: 1>} : vector<8x8xi32>
    %17 = arith.cmpi sle, %16, %15 : vector<8x8xi32>
    %18 = vector.extract_strided_slice %7 {offsets = [0, 0], sizes = [8, 32], strides = [1, 1]} : vector<8x128xf32> to vector<8x32xf32>
    %19 = vector.extract_strided_slice %9 {offsets = [0, 0], sizes = [8, 32], strides = [1, 1]} : vector<8x128xf32> to vector<8x32xf32>
    %20 = vector.extract_strided_slice %14 {offsets = [0, 0], sizes = [8, 32], strides = [1, 1]} : vector<8x128xf32> to vector<8x32xf32>
    %cst_18 = arith.constant dense<0.000000e+00> : vector<8x8xf32>
    %21 = tpu.matmul %18, %19, %cst_18 {dimension_numbers = #tpu.dot_dimension_numbers<[1], [1], [0], [0], [0, 0, 1, 0], [], []>} : vector<8x32xf32>, vector<8x32xf32>, vector<8x8xf32> -> vector<8x8xf32>
    %cst_19 = arith.constant -1.000000e+30 : f32
    %22 = vector.broadcast %cst_19 : f32 to vector<8x8xf32>
    %23 = arith.select %17, %21, %22 : vector<8x8xi1>, vector<8x8xf32>
    %cst_20 = arith.constant dense<0xFF800000> : vector<8xf32>
    %24 = vector.multi_reduction <maximumf>, %23, %cst_20 [1] : vector<8x8xf32> to vector<8xf32>
    %25 = vector.shape_cast %24 : vector<8xf32> to vector<8x1xf32>
    %26 = vector.broadcast %25 : vector<8x1xf32> to vector<8x8xf32>
    %27 = arith.subf %23, %26 : vector<8x8xf32>
    %28 = math.exp %27 : vector<8x8xf32>
    %cst_21 = arith.constant dense<0.000000e+00> : vector<8xf32>
    %29 = vector.multi_reduction <add>, %28, %cst_21 [1] : vector<8x8xf32> to vector<8xf32>
    %30 = vector.shape_cast %29 : vector<8xf32> to vector<8x1xf32>
    %31 = tpu.reciprocal %30 : vector<8x1xf32> -> vector<8x1xf32>
    %32 = vector.broadcast %31 : vector<8x1xf32> to vector<8x8xf32>
    %33 = arith.mulf %28, %32 : vector<8x8xf32>
    %cst_22 = arith.constant dense<0.000000e+00> : vector<8x32xf32>
    %34 = tpu.matmul %33, %20, %cst_22 {dimension_numbers = #tpu.dot_dimension_numbers<[1], [0], [0], [1], [0, 0, 1, 1], [], []>} : vector<8x8xf32>, vector<8x32xf32>, vector<8x32xf32> -> vector<8x32xf32>
    %35 = vector.extract_strided_slice %7 {offsets = [0, 32], sizes = [8, 32], strides = [1, 1]} : vector<8x128xf32> to vector<8x32xf32>
    %36 = vector.extract_strided_slice %9 {offsets = [0, 32], sizes = [8, 32], strides = [1, 1]} : vector<8x128xf32> to vector<8x32xf32>
    %37 = vector.extract_strided_slice %14 {offsets = [0, 32], sizes = [8, 32], strides = [1, 1]} : vector<8x128xf32> to vector<8x32xf32>
    %cst_23 = arith.constant dense<0.000000e+00> : vector<8x8xf32>
    %38 = tpu.matmul %35, %36, %cst_23 {dimension_numbers = #tpu.dot_dimension_numbers<[1], [1], [0], [0], [0, 0, 1, 0], [], []>} : vector<8x32xf32>, vector<8x32xf32>, vector<8x8xf32> -> vector<8x8xf32>
    %cst_24 = arith.constant -1.000000e+30 : f32
    %39 = vector.broadcast %cst_24 : f32 to vector<8x8xf32>
    %40 = arith.select %17, %38, %39 : vector<8x8xi1>, vector<8x8xf32>
    %cst_25 = arith.constant dense<0xFF800000> : vector<8xf32>
    %41 = vector.multi_reduction <maximumf>, %40, %cst_25 [1] : vector<8x8xf32> to vector<8xf32>
    %42 = vector.shape_cast %41 : vector<8xf32> to vector<8x1xf32>
    %43 = vector.broadcast %42 : vector<8x1xf32> to vector<8x8xf32>
    %44 = arith.subf %40, %43 : vector<8x8xf32>
    %45 = math.exp %44 : vector<8x8xf32>
    %cst_26 = arith.constant dense<0.000000e+00> : vector<8xf32>
    %46 = vector.multi_reduction <add>, %45, %cst_26 [1] : vector<8x8xf32> to vector<8xf32>
    %47 = vector.shape_cast %46 : vector<8xf32> to vector<8x1xf32>
    %48 = tpu.reciprocal %47 : vector<8x1xf32> -> vector<8x1xf32>
    %49 = vector.broadcast %48 : vector<8x1xf32> to vector<8x8xf32>
    %50 = arith.mulf %45, %49 : vector<8x8xf32>
    %cst_27 = arith.constant dense<0.000000e+00> : vector<8x32xf32>
    %51 = tpu.matmul %50, %37, %cst_27 {dimension_numbers = #tpu.dot_dimension_numbers<[1], [0], [0], [1], [0, 0, 1, 1], [], []>} : vector<8x8xf32>, vector<8x32xf32>, vector<8x32xf32> -> vector<8x32xf32>
    %52 = vector.extract_strided_slice %7 {offsets = [0, 64], sizes = [8, 32], strides = [1, 1]} : vector<8x128xf32> to vector<8x32xf32>
    %53 = vector.extract_strided_slice %9 {offsets = [0, 64], sizes = [8, 32], strides = [1, 1]} : vector<8x128xf32> to vector<8x32xf32>
    %54 = vector.extract_strided_slice %14 {offsets = [0, 64], sizes = [8, 32], strides = [1, 1]} : vector<8x128xf32> to vector<8x32xf32>
    %cst_28 = arith.constant dense<0.000000e+00> : vector<8x8xf32>
    %55 = tpu.matmul %52, %53, %cst_28 {dimension_numbers = #tpu.dot_dimension_numbers<[1], [1], [0], [0], [0, 0, 1, 0], [], []>} : vector<8x32xf32>, vector<8x32xf32>, vector<8x8xf32> -> vector<8x8xf32>
    %cst_29 = arith.constant -1.000000e+30 : f32
    %56 = vector.broadcast %cst_29 : f32 to vector<8x8xf32>
    %57 = arith.select %17, %55, %56 : vector<8x8xi1>, vector<8x8xf32>
    %cst_30 = arith.constant dense<0xFF800000> : vector<8xf32>
    %58 = vector.multi_reduction <maximumf>, %57, %cst_30 [1] : vector<8x8xf32> to vector<8xf32>
    %59 = vector.shape_cast %58 : vector<8xf32> to vector<8x1xf32>
    %60 = vector.broadcast %59 : vector<8x1xf32> to vector<8x8xf32>
    %61 = arith.subf %57, %60 : vector<8x8xf32>
    %62 = math.exp %61 : vector<8x8xf32>
    %cst_31 = arith.constant dense<0.000000e+00> : vector<8xf32>
    %63 = vector.multi_reduction <add>, %62, %cst_31 [1] : vector<8x8xf32> to vector<8xf32>
    %64 = vector.shape_cast %63 : vector<8xf32> to vector<8x1xf32>
    %65 = tpu.reciprocal %64 : vector<8x1xf32> -> vector<8x1xf32>
    %66 = vector.broadcast %65 : vector<8x1xf32> to vector<8x8xf32>
    %67 = arith.mulf %62, %66 : vector<8x8xf32>
    %cst_32 = arith.constant dense<0.000000e+00> : vector<8x32xf32>
    %68 = tpu.matmul %67, %54, %cst_32 {dimension_numbers = #tpu.dot_dimension_numbers<[1], [0], [0], [1], [0, 0, 1, 1], [], []>} : vector<8x8xf32>, vector<8x32xf32>, vector<8x32xf32> -> vector<8x32xf32>
    %69 = vector.extract_strided_slice %7 {offsets = [0, 96], sizes = [8, 32], strides = [1, 1]} : vector<8x128xf32> to vector<8x32xf32>
    %70 = vector.extract_strided_slice %9 {offsets = [0, 96], sizes = [8, 32], strides = [1, 1]} : vector<8x128xf32> to vector<8x32xf32>
    %71 = vector.extract_strided_slice %14 {offsets = [0, 96], sizes = [8, 32], strides = [1, 1]} : vector<8x128xf32> to vector<8x32xf32>
    %cst_33 = arith.constant dense<0.000000e+00> : vector<8x8xf32>
    %72 = tpu.matmul %69, %70, %cst_33 {dimension_numbers = #tpu.dot_dimension_numbers<[1], [1], [0], [0], [0, 0, 1, 0], [], []>} : vector<8x32xf32>, vector<8x32xf32>, vector<8x8xf32> -> vector<8x8xf32>
    %cst_34 = arith.constant -1.000000e+30 : f32
    %73 = vector.broadcast %cst_34 : f32 to vector<8x8xf32>
    %74 = arith.select %17, %72, %73 : vector<8x8xi1>, vector<8x8xf32>
    %cst_35 = arith.constant dense<0xFF800000> : vector<8xf32>
    %75 = vector.multi_reduction <maximumf>, %74, %cst_35 [1] : vector<8x8xf32> to vector<8xf32>
    %76 = vector.shape_cast %75 : vector<8xf32> to vector<8x1xf32>
    %77 = vector.broadcast %76 : vector<8x1xf32> to vector<8x8xf32>
    %78 = arith.subf %74, %77 : vector<8x8xf32>
    %79 = math.exp %78 : vector<8x8xf32>
    %cst_36 = arith.constant dense<0.000000e+00> : vector<8xf32>
    %80 = vector.multi_reduction <add>, %79, %cst_36 [1] : vector<8x8xf32> to vector<8xf32>
    %81 = vector.shape_cast %80 : vector<8xf32> to vector<8x1xf32>
    %82 = tpu.reciprocal %81 : vector<8x1xf32> -> vector<8x1xf32>
    %83 = vector.broadcast %82 : vector<8x1xf32> to vector<8x8xf32>
    %84 = arith.mulf %79, %83 : vector<8x8xf32>
    %cst_37 = arith.constant dense<0.000000e+00> : vector<8x32xf32>
    %85 = tpu.matmul %84, %71, %cst_37 {dimension_numbers = #tpu.dot_dimension_numbers<[1], [0], [0], [1], [0, 0, 1, 1], [], []>} : vector<8x8xf32>, vector<8x32xf32>, vector<8x32xf32> -> vector<8x32xf32>
    %86 = tpu.concatenate %34, %51, %68, %85 in 1 : vector<8x32xf32>, vector<8x32xf32>, vector<8x32xf32>, vector<8x32xf32> -> vector<8x128xf32>
    %c0_38 = arith.constant 0 : index
    %c0_39 = arith.constant 0 : index
    %c0_40 = arith.constant 0 : index
    %87 = vector.load %arg8[%c0_38, %c0_39, %c0_40] : memref<1x8x128xf32, #tpu.memory_space<vmem>>, vector<1x8x128xf32>
    %88 = vector.shape_cast %87 : vector<1x8x128xf32> to vector<8x128xf32>
    %89 = vector.shape_cast %86 : vector<8x128xf32> to vector<1x8x128xf32>
    tpu.vector_store %arg8[%c0_38, %c0_39, %c0_40], %89 {strides = array<i32>} : memref<1x8x128xf32, #tpu.memory_space<vmem>>, vector<1x8x128xf32>,
    return
  }
  func.func @transform_0(%arg0: i32) -> (i32, i32, i32) {
    %c0_i32 = arith.constant 0 : i32
    %c0_i32_0 = arith.constant 0 : i32
    %c0_i32_1 = arith.constant 0 : i32
    return %arg0, %c0_i32, %c0_i32_0 : i32, i32, i32
  }
  func.func @transform_1(%arg0: i32) -> (i32, i32, i32) {
    %c0_i32 = arith.constant 0 : i32
    %c0_i32_0 = arith.constant 0 : i32
    %c0_i32_1 = arith.constant 0 : i32
    return %arg0, %c0_i32, %c0_i32_0 : i32, i32, i32
  }
  func.func @transform_2(%arg0: i32) -> (i32, i32, i32) {
    %c0_i32 = arith.constant 0 : i32
    %c0_i32_0 = arith.constant 0 : i32
    %c0_i32_1 = arith.constant 0 : i32
    return %arg0, %c0_i32, %c0_i32_0 : i32, i32, i32
  }
  func.func @transform_3(%arg0: i32) -> (i32, i32) {
    %c0_i32 = arith.constant 0 : i32
    %c0_i32_0 = arith.constant 0 : i32
    %c0_i32_1 = arith.constant 0 : i32
    return %c0_i32, %c0_i32_0 : i32, i32
  }
  func.func @transform_4(%arg0: i32) -> (i32, i32) {
    %c0_i32 = arith.constant 0 : i32
    %c0_i32_0 = arith.constant 0 : i32
    %c0_i32_1 = arith.constant 0 : i32
    return %c0_i32, %c0_i32_0 : i32, i32
  }
  func.func @transform_5(%arg0: i32) -> (i32, i32) {
    %c0_i32 = arith.constant 0 : i32
    %c0_i32_0 = arith.constant 0 : i32
    %c0_i32_1 = arith.constant 0 : i32
    return %c0_i32, %c0_i32_0 : i32, i32
  }
  func.func @transform_6(%arg0: i32) -> (i32, i32) {
    %c0_i32 = arith.constant 0 : i32
    %c0_i32_0 = arith.constant 0 : i32
    %c0_i32_1 = arith.constant 0 : i32
    return %c0_i32, %c0_i32_0 : i32, i32
  }
  func.func @transform_7(%arg0: i32) -> (i32, i32, i32) {
    %c0_i32 = arith.constant 0 : i32
    %c0_i32_0 = arith.constant 0 : i32
    %c0_i32_1 = arith.constant 0 : i32
    return %arg0, %c0_i32, %c0_i32_0 : i32, i32, i32
  }
}

</mosaic_0001>

<bundles_post_ra>
// kernel: tpu_custom_call.1
= control target key start
LH: loop header
LB: loop body
LE: loop exit
PB: predicated region body
PF: predicated region fallthrough
CT: control target
= control target key end

     0   :  { %s1785_s0 = inlined_call_operand.hbm [shape: f32[2,8,128], index: 0, kind: input, shape index: {}]   ;;  %s1786_s1 = inlined_call_operand.hbm [shape: f32[2,8,128], index: 1, kind: input, shape index: {}]   ;;  %s1787_s2 = inlined_call_operand.hbm [shape: f32[2,8,128], index: 2, kind: input, shape index: {}]   ;;  %s1788_s3 = inlined_call_operand.hbm [shape: f32[128,128], index: 3, kind: input, shape index: {}]   ;;  %s1789_s4 = inlined_call_operand.hbm [shape: f32[128,128], index: 4, kind: input, shape index: {}]   ;;  %s1790_s5 = inlined_call_operand.hbm [shape: f32[128,128], index: 5, kind: input, shape index: {}]   ;;  %s1791_s6 = inlined_call_operand.vmem [shape: f32[1,128], index: 6, kind: input, shape index: {}]   ;;  %s1792_s7 = inlined_call_operand.hbm [shape: f32[2,8,128], index: 7, kind: output, shape index: {}]  }
   0x1   :  { %1804 = sst [smem:[#allocation24_spill]] %s1786_s1 }
   0x2   :  { %1805 = sst [smem:[#allocation25_spill]] %s1788_s3 }
   0x3   :  { %12 = vsyncpa [#allocation3], 0 }
   0x4   :  { %14 = vsyncpa [#allocation3 + $0x1], 0 }
   0x5   :  { %15 = vsyncpa [#allocation6], 0 }
   0x6   :  { %17 = vsyncpa [#allocation6 + $0x1], 0 }
   0x7   :  { %18 = vsyncpa [#allocation9], 0 }
   0x8   :  { %19 = vsyncpa [#allocation12], 0 }
   0x9   :  { %20 = vsyncpa [#allocation4], 0 }
   0xa   :  { %22 = vsyncpa [#allocation4 + $0x1], 0  ;;  %s1484_s24 = smov 0   ;;  %s1486_s25 = smov 0  }
   0xb   :  { %s1488_s26 = smov 0   ;;  %s1490_s27 = smov 0  }
   0xc LB: > { %1806 = sst [smem:[#allocation19_spill]] %s1422_s24  ;;  %s1508_s8 = sadd.s32 4294967295, %s1434_s27   ;;  %s1434_s27 = sphi %s1490_s27, %s1830_s27   ;;  %s1430_s26 = sphi %s1488_s26, %s1834_s26   ;;  %s1426_s25 = sphi %s1486_s25, %s1833_s25   ;;  %s1422_s24 = sphi %s1484_s24, %s1832_s24  }
   0xd   : > { %1807 = sst [smem:[#allocation20_spill]] %s1434_s27  ;;  %p1032_p0 = scmp.ge.s32.totalorder %s1434_s27, 1 }
   0xe   : > { %s1808_s3 = sld [smem:[#allocation25_spill]]  ;;  %p1803_p1 = scmp.eq.s32.totalorder %s1508_s8, 0 }
   0xf   : > { %p221_p2 = scmp.lt.s32.totalorder %s1434_s27, 3  ;;  %s1436_s10 = smov [#allocation8]  }
  0x10   : > { %s234_s11 = sshll.u32 %s1436_s10, 4  ;;  %s1793_s13 = smov 128   ;;  %s235_s11 = int_to_ptr.vmem [resolvable:$true] %s234_s11 }
  0x11   : > { %p1513_p3 = pnand %p1032_p0, %p221_p2  ;;  %s1795_s14 = smov 8  }
  0x12   : > { %s1031_s15 = sadd.s32 4294967294, %s1434_s27   ;;  %s1533_s16 = sadd.s32 1, %s1434_s27  }
  0x13   : > { %p1087_p4 = pneg %p1513_p3  ;;  %1811 = sst [smem:[#allocation21_spill]] %s1533_s16 }
  0x14   : > { %s232_s30 = sshll.u32 %s1808_s3, 4  ;;  %s35_s17 = sadd.s32 1, %s1430_s26  ;;  %s233_s30 = int_to_ptr.hbm [resolvable:$true] %s232_s30 }
  0x15   : > { %p1522_p6 = pnand %p1087_p4, %p1803_p1  ;;  %s32_s18 = ssub.s32 %s1434_s27, %s1533_s16 }
  0x16   : > { %p42_p7 = scmp.ne.s32.totalorder %s1430_s26, %s1426_s25  ;;  %p33_p8 = scmp.eq.s32.totalorder %s32_s18, 0 }
  0x17   : > { %1090 = dma.hbm_to_vmem [thread:$0]  (!%p1522_p6), %s233_s30, 2048, %s235_s11, [#allocation9], %s1793_s13, %s1793_s13, %s1795_s14  }
  0x18   : > { %p43_p9 = scmp.eq.s32.totalorder %s1434_s27, 0  ;;  %p48_p10 = scmp.ne.s32.totalorder %s1426_s25, %s1422_s24 }
  0x19   : > { %p208_p11 = scmp.eq.s32.totalorder %s1508_s8, 1  ;;  %p214_p2 = scmp.eq.s32.totalorder %s1031_s15, 1 }
  0x1a   : > { %s1545_s19 = scalar_select %p33_p8, %s1430_s26, %s35_s17  }
  0x1b   : > { %p44_p12 = por %p43_p9, %p42_p7  ;;  %p1549_p13 = por %p1803_p1, %p48_p10 }
  0x1c   : > { %1812 = sst [smem:[#allocation22_spill]] %s1545_s19  ;;  %p1553_p0 = por %p208_p11, %p42_p7 }
  0x1d   : > { %p1114_p4 = scmp.lt.s32.totalorder %s1434_s27, 2  ;;  %s1797_s22 = sand.u32 1, %s1430_s26  }
  0x1e   : > { %p1559_p5 = por %p214_p2, %p48_p10  ;;  %s1565_s28 = sshll.u32 %s1797_s22, 3 }
  0x1f   : > { %s1568_s29 = sshll.u32 %s1434_s27, 3  ;;  %p1570_p8 = pnand %p1114_p4, %p44_p12 }
  0x20   : > { %s1815_s23 = scalar_select %p1559_p5, 1, 0 }
  0x21   : > { %s298_s10 = sand.u32 1, %s1434_s27   ;;  %s1818_s1 = sld [smem:[#allocation24_spill]] }
  0x22   : > { %1816 = sst [smem:[#allocation23_spill]] %s1815_s23  ;;  %s302_s18 = scalar_lea.vmem [#allocation5], %s1565_s28 }
  0x23   : > { %s310_s13 = sshll.u32 %s302_s18, 4  ;;  %s246_s19 = sshll.u32 %s1789_s4, 4  ;;  %s311_s13 = int_to_ptr.vmem [resolvable:$true] %s310_s13  ;;  %s247_s19 = int_to_ptr.hbm [resolvable:$true] %s246_s19 }
  0x24   : > { %s1583_s16 = scalar_lea.sflag [#allocation6], %s298_s10  ;;  %p1210_p9 = pneg %p1570_p8 }
  0x27   : > { %s306_s17 = scalar_lea.hbm %s1818_s1, %s1568_s29 }
  0x28   : > { %s308_s14 = sshll.u32 %s306_s17, 4  ;;  %s1213_s17 = scalar_lea.hbm %s1818_s1, 16  ;;  %s309_s14 = int_to_ptr.hbm [resolvable:$true] %s308_s14 }
  0x29   : > { %s1206_s23 = sshra.s32 %s309_s14, 4  ;;  %s1207_s23 = int_to_ptr.hbm [resolvable:$true] %s1206_s23 }
  0x2a   : > { %s1208_s24 = scalar_lea.hbm %s1207_s23, 8  ;;  %p1214_p12 = scmp.lt.s32.totalorder %s1207_s23, %s1818_s1 }
  0x2b   : > { %p1209_p7 = scmp.ne.s32.totalorder %s1207_s23, %s1208_s24  ;;  %p1215_p2 = scmp.lt.s32.totalorder %s1213_s17, %s1208_s24 }
  0x2d   : > { %p1211_p10 = pnand %p1210_p9, %p1209_p7  ;;  %p1216_p4 = por %p1215_p2, %p1214_p12 }
  0x2f   : > { %p1212_p11 = pneg %p1211_p10 }
  0x31   : > { %p1217_p1 = pnand %p1216_p4, %p1212_p11 }
  0x33   : > { %1220 = shalt.err (!%p1217_p1)
}
  0x34   : > { %1103 = dma.hbm_to_vmem [thread:$0]  (!%p1570_p8), %s309_s14, 128, %s311_s13, %s1583_s16  }
  0x35   : > { %s1439_s3 = smov [#allocation10]   ;;  %s260_s27 = sshll.u32 %s1790_s5, 4  ;;  %s261_s27 = int_to_ptr.hbm [resolvable:$true] %s260_s27 }
  0x36   : > { %s248_s22 = sshll.u32 %s1439_s3, 4  ;;  %s1819_s24 = smov 8   ;;  %s249_s22 = int_to_ptr.vmem [resolvable:$true] %s248_s22 }
  0x37   : > { %s1820_s23 = smov 128   ;;  %s1440_s15 = smov [#allocation11]  }
  0x38   : > { %1093 = dma.hbm_to_vmem [thread:$0]  (!%p1522_p6), %s247_s19, 2048, %s249_s22, [#allocation9], %s1820_s23, %s1820_s23, %s1819_s24  }
  0x39   : > { %s262_s17 = sshll.u32 %s1440_s15, 4  ;;  %s287_s18 = scalar_lea.hbm %s1785_s0, %s1568_s29  ;;  %s263_s17 = int_to_ptr.vmem [resolvable:$true] %s262_s17 }
  0x3a   : > { %1096 = dma.hbm_to_vmem [thread:$0]  (!%p1522_p6), %s261_s27, 2048, %s263_s17, [#allocation12], %s1820_s23, %s1820_s23, %s1819_s24  }
  0x3b   : > { %s289_s3 = sshll.u32 %s287_s18, 4  ;;  %s283_s10 = scalar_lea.vmem [#allocation2], %s1565_s28  ;;  %s290_s3 = int_to_ptr.hbm [resolvable:$true] %s289_s3 }
  0x3c   : > { %s291_s11 = sshll.u32 %s283_s10, 4  ;;  %s1821_s1 = sand.u32 1, %s1430_s26   ;;  %s292_s11 = int_to_ptr.vmem [resolvable:$true] %s291_s11 }
  0x3d   : > { %s280_s19 = scalar_lea.sflag [#allocation3], %s1821_s1  ;;  %s1296_s22 = sshra.s32 %s290_s3, 4  ;;  %s1297_s22 = int_to_ptr.hbm [resolvable:$true] %s1296_s22 }
  0x3e   : > { %s1298_s15 = scalar_lea.hbm %s1297_s22, 8  ;;  %s1303_s14 = scalar_lea.hbm %s1785_s0, 16 }
  0x3f   : > { %p1299_p1 = scmp.ne.s32.totalorder %s1297_s22, %s1298_s15  ;;  %p1304_p6 = scmp.lt.s32.totalorder %s1297_s22, %s1785_s0 }
  0x40   : > { %p1305_p11 = scmp.lt.s32.totalorder %s1303_s14, %s1298_s15 }
  0x41   : > { %p1301_p7 = pnand %p1299_p1, %p1210_p9 }
  0x42   : > { %p1306_p12 = por %p1305_p11, %p1304_p6 }
  0x43   : > { %p1302_p10 = pneg %p1301_p7 }
  0x45   : > { %p1307_p2 = pnand %p1306_p12, %p1302_p10 }
  0x47   : > { %1310 = shalt.err (!%p1307_p2)
}
  0x48   : > { %1100 = dma.hbm_to_vmem [thread:$0]  (!%p1570_p8), %s290_s3, 128, %s292_s11, %s280_s19  }
  0x49   : > { %s325_s17 = scalar_lea.hbm %s1787_s2, %s1568_s29  ;;  %s321_s10 = scalar_lea.vmem [#allocation7], %s1565_s28 }
  0x4a   : > { %s327_s18 = sshll.u32 %s325_s17, 4  ;;  %s329_s12 = sshll.u32 %s321_s10, 4  ;;  %s328_s18 = int_to_ptr.hbm [resolvable:$true] %s327_s18  ;;  %s330_s12 = int_to_ptr.vmem [resolvable:$true] %s329_s12 }
  0x4b   : > { %s1326_s22 = sshra.s32 %s328_s18, 4  ;;  %s1333_s3 = scalar_lea.hbm %s1787_s2, 16  ;;  %s1327_s22 = int_to_ptr.hbm [resolvable:$true] %s1326_s22 }
  0x4c   : > { %s1328_s15 = scalar_lea.hbm %s1327_s22, 8  ;;  %p1334_p10 = scmp.lt.s32.totalorder %s1327_s22, %s1787_s2 }
  0x4d   : > { %p1329_p4 = scmp.ne.s32.totalorder %s1327_s22, %s1328_s15  ;;  %p1335_p6 = scmp.lt.s32.totalorder %s1333_s3, %s1328_s15 }
  0x4f   : > { %p1331_p1 = pnand %p1329_p4, %p1210_p9  ;;  %p1336_p11 = por %p1335_p6, %p1334_p10 }
  0x51   : > { %p1332_p7 = pneg %p1331_p1 }
  0x53   : > { %p1337_p12 = pnand %p1336_p11, %p1332_p7 }
  0x55   : > { %1340 = shalt.err (!%p1337_p12)
}
  0x56   : > { %1106 = dma.hbm_to_vmem [thread:$0]  (!%p1570_p8), %s328_s18, 128, %s330_s12, %s1583_s16  }
  0x57   : > { %338 = sbr.rel (%p1513_p3) target bundleno = 1699 (0x6a3), region = 48  ;;  %s1650_s28 = sand.u32 (!%p1513_p3), 1, %s1426_s25  }
  0x58   : > { %s1653_s29 = sshll.u32 (!%p1513_p3), %s1650_s28, 3  ;;  %s341_s27 = scalar_lea.sflag (!%p1513_p3), [#allocation3], %s1650_s28 }
  0x59   : > { %s344_s24 = scalar_lea.vmem (!%p1513_p3), [#allocation2], %s1653_s29 }
  0x5c   : > { %1401 = dma.done.wait (%p1549_p13), %s341_s27, 128  }
  0x5d   : > { %1403 = vsyncadd (%p1549_p13), %s341_s27, 4294967168  ;;  %s350_s9 = sand.u32 1, %s1508_s8   ;;  %s354_s30 = scalar_lea.vmem [#allocation5], %s1653_s29 }
  0x5e   : > { %s351_s16 = scalar_lea.sflag [#allocation6], %s350_s9 }
  0x5f   : > { %1405 = dma.done.wait (%p1549_p13), %s351_s16, 256  }
  0x60   : > { %1407 = vsyncadd (%p1549_p13), %s351_s16, 4294967040  ;;  %s364_s1 = scalar_lea.vmem [#allocation7], %s1653_s29  ;;  %p1822_p3 = scmp.eq.s32.totalorder %s1508_s8, 0 }
  0x62   : > { %1409 = dma.done.wait (%p1822_p3), [#allocation9], 4096   ;;  %p1823_p8 = pmov %p1822_p3 }
  0x63   : > { %p1824_p9 = pmov %p1822_p3 }
  0x64   : > { %1411 = vsyncadd (%p1823_p8), [#allocation9], 4294963200 }
  0x65   : > { %1413 = dma.done.wait (%p1824_p9), [#allocation12], 2048   ;;  %p1825_p2 = pmov %p1822_p3 }
  0x66   : > { %v475_v0 = vld [vmem:[#allocation10 + $0x78] sm:$0xff]  ;;  %v474_v1 = vld [vmem:[#allocation10 + $0x70] sm:$0xff]  ;;  %v473_v4 = vld [vmem:[#allocation10 + $0x68] sm:$0xff]  ;;  %vm541_vm0 = vcmask 261120   ;;  %s1441_s20 = smov 96   ;;  %s1442_s18 = smov 64   ;;  %v536_v57 = vlaneseq }
  0x67   : > { %1415 = vsyncadd (%p1825_p2), [#allocation12], 4294965248  ;;  %v439_v2 = vld [vmem:[#allocation8 + $0x78] sm:$0xff]  ;;  %476 = vmatpush.msra.mxu1 %v475_v0  ;;  %v438_v3 = vld [vmem:[#allocation8 + $0x70] sm:$0xff]  ;;  %s1443_s10 = smov 32   ;;  %vm569_vm2 = vcmask 64512  }
  0x68   : > { %440 = vmatpush.msra.mxu0 %v439_v2  ;;  %v437_v5 = vld [vmem:[#allocation8 + $0x68] sm:$0xff]  ;;  %v472_v6 = vld [vmem:[#allocation10 + $0x60] sm:$0xff]  ;;  %v471_v8 = vld [vmem:[#allocation10 + $0x58] sm:$0xff]  ;;  %v1701_v58 = vshrl.u32 %v536_v57, 7  ;;  %v1703_v59 = vand.u32 127, %v536_v57  ;;  %s1064_s12 = sshll.u32 %s1508_s8, 3 }
  0x69   : > { %477 = vmatpush.msra.mxu1 %v474_v1  ;;  %v436_v7 = vld [vmem:[#allocation8 + $0x60] sm:$0xff]  ;;  %v435_v9 = vld [vmem:[#allocation8 + $0x58] sm:$0xff]  ;;  %v470_v10 = vld [vmem:[#allocation10 + $0x50] sm:$0xff]  ;;  %s884_s13 = scalar_lea.hbm %s1792_s7, %s1064_s12  ;;  %s420_s14 = scalar_lea.vmem [#allocation13], %s1653_s29 }
  0x6a   : > { %441 = vmatpush.msra.mxu0 %v438_v3  ;;  %v434_v11 = vld [vmem:[#allocation8 + $0x50] sm:$0xff]  ;;  %v469_v12 = vld [vmem:[#allocation10 + $0x48] sm:$0xff]  ;;  %v511_v14 = vld [vmem:[#allocation11 + $0x78] sm:$0xff]  ;;  %vm540_vm1 = vcmp.le.s32.totalorder %v1703_v59, %v1701_v58  ;;  %s886_s3 = sshll.u32 %s420_s14, 4  ;;  %s888_s11 = sshll.u32 %s884_s13, 4  ;;  %s887_s3 = int_to_ptr.vmem [resolvable:$true] %s886_s3  ;;  %s889_s11 = int_to_ptr.hbm [resolvable:$true] %s888_s11 }
  0x6b   : > { %478 = vmatpush.msra.mxu1 %v473_v4  ;;  %v433_v13 = vld [vmem:[#allocation8 + $0x48] sm:$0xff]  ;;  %v510_v15 = vld [vmem:[#allocation11 + $0x70] sm:$0xff]  ;;  %v468_v16 = vld [vmem:[#allocation10 + $0x40] sm:$0xff]  ;;  %516 = vmatpush.msra.mxu2 %v511_v14  ;;  %s874_s8 = scalar_lea.sflag [#allocation4], %s1650_s28  ;;  %s1370_s19 = sshra.s32 %s889_s11, 4  ;;  %s1371_s19 = int_to_ptr.hbm [resolvable:$true] %s1370_s19 }
  0x6c   : > { %442 = vmatpush.msra.mxu0 %v437_v5  ;;  %v432_v17 = vld [vmem:[#allocation8 + $0x40] sm:$0xff]  ;;  %v509_v18 = vld [vmem:[#allocation11 + $0x68] sm:$0xff]  ;;  %v467_v19 = vld [vmem:[#allocation10 + $0x38] sm:$0xff]  ;;  %s1372_s27 = scalar_lea.hbm %s1371_s19, 8  ;;  %s1376_s9 = scalar_lea.hbm %s1792_s7, 16 }
  0x6d   : > { %479 = vmatpush.msra.mxu1 %v472_v6  ;;  %v431_v20 = vld [vmem:[#allocation8 + $0x38] sm:$0xff]  ;;  %517 = vmatpush.msra.mxu2 %v510_v15  ;;  %v508_v21 = vld [vmem:[#allocation11 + $0x60] sm:$0xff]  ;;  %v466_v22 = vld [vmem:[#allocation10 + $0x30] sm:$0xff]  ;;  %p1373_p13 = scmp.ne.s32.totalorder %s1371_s19, %s1372_s27  ;;  %p1377_p7 = scmp.lt.s32.totalorder %s1371_s19, %s1792_s7 }
  0x6e   : > { %443 = vmatpush.msra.mxu0 %v436_v7  ;;  %v430_v23 = vld [vmem:[#allocation8 + $0x30] sm:$0xff]  ;;  %v507_v24 = vld [vmem:[#allocation11 + $0x58] sm:$0xff]  ;;  %v465_v25 = vld [vmem:[#allocation10 + $0x28] sm:$0xff]  ;;  %p1378_p10 = scmp.lt.s32.totalorder %s1376_s9, %s1372_s27 }
  0x6f   : > { %480 = vmatpush.msra.mxu1 %v471_v8  ;;  %518 = vmatpush.msra.mxu2 %v509_v18  ;;  %v429_v26 = vld [vmem:[#allocation8 + $0x28] sm:$0xff]  ;;  %v506_v27 = vld [vmem:[#allocation11 + $0x50] sm:$0xff]  ;;  %v464_v28 = vld [vmem:[#allocation10 + $0x20] sm:$0xff]  ;;  %p1374_p4 = pnand %p1373_p13, %p1553_p0 }
  0x70   : > { %444 = vmatpush.msra.mxu0 %v435_v9  ;;  %v428_v29 = vld [vmem:[#allocation8 + $0x20] sm:$0xff]  ;;  %v505_v30 = vld [vmem:[#allocation11 + $0x48] sm:$0xff]  ;;  %v463_v31 = vld [vmem:[#allocation10 + $0x18] sm:$0xff]  ;;  %p1379_p6 = por %p1378_p10, %p1377_p7 }
  0x71   : > { %481 = vmatpush.msra.mxu1 %v470_v10  ;;  %519 = vmatpush.msra.mxu2 %v508_v21  ;;  %v427_v32 = vld [vmem:[#allocation8 + $0x18] sm:$0xff]  ;;  %v504_v33 = vld [vmem:[#allocation11 + $0x40] sm:$0xff]  ;;  %v462_v34 = vld [vmem:[#allocation10 + $0x10] sm:$0xff]  ;;  %p1375_p1 = pneg %p1374_p4 }
  0x72   : > { %445 = vmatpush.msra.mxu0 %v434_v11  ;;  %v426_v35 = vld [vmem:[#allocation8 + $0x10] sm:$0xff]  ;;  %v503_v36 = vld [vmem:[#allocation11 + $0x38] sm:$0xff]  ;;  %v461_v37 = vld [vmem:[#allocation10 + $0x8] sm:$0xff] }
  0x73   : > { %482 = vmatpush.msra.mxu1 %v469_v12  ;;  %520 = vmatpush.msra.mxu2 %v507_v24  ;;  %v425_v38 = vld [vmem:[#allocation8 + $0x8] sm:$0xff]  ;;  %v502_v39 = vld [vmem:[#allocation11 + $0x30] sm:$0xff]  ;;  %v460_v40 = vld [vmem:[#allocation10] sm:$0xff]  ;;  %p1380_p11 = pnand %p1379_p6, %p1375_p1 }
  0x74   : > { %446 = vmatpush.msra.mxu0 %v433_v13  ;;  %v424_v41 = vld [vmem:[#allocation8] sm:$0xff]  ;;  %v421_v43 = vld [vmem:[%s344_s24] sm:$0xff]  ;;  %v501_v44 = vld [vmem:[#allocation11 + $0x28] sm:$0xff] }
  0x75   : > { %483 = vmatpush.msra.mxu1 %v468_v16  ;;  %521 = vmatpush.msra.mxu2 %v506_v27  ;;  %v422_v42 = vld [vmem:[%s354_s30] sm:$0xff]  ;;  %v499_v46 = vld [vmem:[#allocation11 + $0x18] sm:$0xff]  ;;  %v498_v47 = vld [vmem:[#allocation11 + $0x10] sm:$0xff] }
  0x76   : > { %447 = vmatpush.msra.mxu0 %v432_v17  ;;  %v500_v45 = vld [vmem:[#allocation11 + $0x20] sm:$0xff]  ;;  %v497_v48 = vld [vmem:[#allocation11 + $0x8] sm:$0xff]  ;;  %v423_v50 = vld [vmem:[%s364_s1] sm:$0xff] }
  0x77   : > { %484 = vmatpush.msra.mxu1 %v467_v19  ;;  %522 = vmatpush.msra.mxu2 %v505_v30  ;;  %v496_v49 = vld [vmem:[#allocation11] sm:$0xff]  ;;  %v1159_v53 = vld [vmem:[%s1791_s6] ss:$0 sm:$0xff] }
  0x78   : > { %448 = vmatpush.msra.mxu0 %v431_v20 }
  0x79   : > { %485 = vmatpush.msra.mxu1 %v466_v22  ;;  %523 = vmatpush.msra.mxu2 %v504_v33 }
  0x7a   : > { %449 = vmatpush.msra.mxu0 %v430_v23 }
  0x7b   : > { %486 = vmatpush.msra.mxu1 %v465_v25  ;;  %524 = vmatpush.msra.mxu2 %v503_v36 }
  0x7c   : > { %450 = vmatpush.msra.mxu0 %v429_v26 }
  0x7d   : > { %487 = vmatpush.msra.mxu1 %v464_v28  ;;  %525 = vmatpush.msra.mxu2 %v502_v39 }
  0x7e   : > { %451 = vmatpush.msra.mxu0 %v428_v29 }
  0x7f   : > { %488 = vmatpush.msra.mxu1 %v463_v31  ;;  %526 = vmatpush.msra.mxu2 %v501_v44 }
  0x80   : > { %452 = vmatpush.msra.mxu0 %v427_v32 }
  0x81   : > { %489 = vmatpush.msra.mxu1 %v462_v34  ;;  %527 = vmatpush.msra.mxu2 %v500_v45 }
  0x82   : > { %453 = vmatpush.msra.mxu0 %v426_v35 }
  0x83   : > { %490 = vmatpush.msra.mxu1 %v461_v37  ;;  %528 = vmatpush.msra.mxu2 %v499_v46 }
  0x84   : > { %454 = vmatpush.msra.mxu0 %v425_v38 }
  0x85   : > { %491 = vmatpush.msra.mxu1 %v460_v40  ;;  %529 = vmatpush.msra.mxu2 %v498_v47 }
  0x86   : > { %455 = vmatpush.msra.mxu0 %v424_v41  ;;  %492 = vmatmul.f32.vlgmr.msra.gmra.mxu1 %v422_v42 }
  0x87   : > { %456 = vmatmul.f32.vlgmr.msra.gmra.mxu0 %v421_v43  ;;  %530 = vmatpush.msra.mxu2 %v497_v48 }
  0x89   : > { %531 = vmatpush.msra.mxu2 %v496_v49 }
  0x8a   : > { %532 = vmatmul.f32.vlgmr.msra.gmra.mxu2 %v423_v50 }
 0x103   : > { %v1682_v51 = vpop.f32.mrf.mxu1 }
 0x104   : > { %619 = vrot.lane.b32.xlu1 %v1682_v51, %s1441_s20  ;;  %1051 = vmatpush.xpose.msk.msra.mxu3 %vm541_vm0, %v1682_v51  ;;  %v457_v52 = vpop.f32.mrf.mxu0 }
 0x107   : > { %1052 = vmatmul.msk.f32.vlgmr.msra.gmra.mxu3 %vm541_vm0, %v457_v52 }
 0x10c   : > { %617 = vrot.lane.b32.xlu1 %v457_v52, %s1441_s20 }
 0x10d   : > { %v533_v54 = vpop.f32.mrf.mxu2 }
 0x10e   : > { %v1695_v55 = vadd.f32 %v1159_v53, %v533_v54 }
 0x110   : > { %612 = vmatpush.msrb.mxu3 %v1695_v55 }
 0x114   : > { %699 = vrot.lane.b32.xlu1 %v1682_v51, %s1442_s18 }
 0x11c   : > { %697 = vrot.lane.b32.xlu1 %v457_v52, %s1442_s18 }
 0x124   : > { %776 = vrot.lane.b32.xlu1 %v457_v52, %s1443_s10 }
 0x176   : > { %v620_v56 = vpop.permute.xlu1 %619 }
 0x177   : > { %1054 = vmatpush.xpose.msk.msra.mxu3 %vm541_vm0, %v620_v56 }
 0x17e   : > { %v618_v15 = vpop.permute.xlu1 %617 }
 0x186   : > { %v700_v18 = vpop.permute.xlu1 %699 }
 0x18a   : > { %v565_v60 = vpop.f32.mrf.mxu3 }
 0x18b   : > { %v568_v61 = vsel %vm540_vm1, %v565_v60, -1e+30 }
 0x18c   : > { %v570_v62 = vsel %vm569_vm2, %v568_v61, -inf }
 0x18d   : > { %571 = vmax.xlane.f32.xlu0 %v570_v62 }
 0x18e   : > { %v698_v29 = vpop.permute.xlu1 %697 }
 0x196   : > { %v777_v34 = vpop.permute.xlu1 %776 }
 0x200   : > { %v572_v63 = vpop.xlane.xlu0 %571 }
 0x201   : > { %v573_v0 = vsub.f32 %v568_v61, %v572_v63 }
 0x203   : > { %v574_v1 = vmul.f32 1.442695, %v573_v0 }
 0x205   : > { %1160 = vpow2.f32 %v574_v1 }
 0x20b   : > { %v1161_v2 = vpop.eup %1160 }
 0x20c   : > { %v576_v3 = vsel %vm569_vm2, %v1161_v2, 0.0 }
 0x20d   : > { %577 = vadd.xlane.f32.xlu0 %v576_v3 }
 0x221   : > { %671 = vrot.lane.b32.xlu0 %v1695_v55, %s1441_s20 }
 0x280   : > { %v578_v4 = vpop.xlane.xlu0 %577 }
 0x281   : > { %1162 = vrcp.f32 %v578_v4  ;;  %v590_v8 = vand.u32 2147483648, %v578_v4  ;;  %v588_v10 = vand.u32 2147483647, %v578_v4  ;;  %vm584_vm4 = vweird.f32 %v578_v4 }
 0x283   : > { %v591_v12 = vor.u32 1.1754944e-38, %v590_v8  ;;  %vm589_vm6 = vcmp.eq.f32.partialorder %v588_v10, 8.507059e+37 }
 0x287   : > { %v1163_v5 = vpop.eup %1162 }
 0x288   : > { %v580_v6 = vmul.f32 %v1163_v5, %v578_v4  ;;  %vm585_vm3 = vweird.f32 %v1163_v5 }
 0x289   : > { %vm586_vm5 = vmor %vm584_vm4, %vm585_vm3 }
 0x28a   : > { %v581_v7 = vsub.f32 1.0, %v580_v6 }
 0x28c   : > { %v582_v9 = vmul.f32 %v1163_v5, %v581_v7 }
 0x28e   : > { %v583_v11 = vadd.f32 %v1163_v5, %v582_v9 }
 0x290   : > { %v587_v13 = vsel %vm586_vm5, %v1163_v5, %v583_v11  ;;  %vm868_vm5 = vcmask 523264  }
 0x291   : > { %v592_v14 = vsel %vm589_vm6, %v591_v12, %v587_v13 }
 0x292   : > { %v593_v16 = vmul.f32 %v1161_v2, %v592_v14 }
 0x293   : > { %v672_v17 = vpop.permute.xlu0 %671 }
 0x294   : > { %1053 = vmatmul.msk.f32.vlgmr.msrb.gmra.mxu3 %vm569_vm2, %v593_v16 }
 0x295   : > { %692 = vmatpush.msrb.mxu3 %v672_v17 }
 0x29c   : > { %1055 = vmatmul.msk.f32.vlgmr.msra.gmra.mxu3 %vm541_vm0, %v618_v15 }
 0x29d   : > { %1057 = vmatpush.xpose.msk.msra.mxu3 %vm541_vm0, %v700_v18 }
 0x317   : > { %v1717_v19 = vpop.f32.mrf.mxu3 }
 0x31f   : > { %v642_v20 = vpop.f32.mrf.mxu3 }
 0x320   : > { %v645_v21 = vsel %vm540_vm1, %v642_v20, -1e+30 }
 0x321   : > { %v646_v22 = vsel %vm569_vm2, %v645_v21, -inf }
 0x322   : > { %647 = vmax.xlane.f32.xlu2 %v646_v22 }
 0x395   : > { %v648_v23 = vpop.xlane.xlu2 %647 }
 0x396   : > { %v649_v24 = vsub.f32 %v645_v21, %v648_v23 }
 0x398   : > { %v650_v25 = vmul.f32 1.442695, %v649_v24 }
 0x39a   : > { %1164 = vpow2.f32 %v650_v25 }
 0x3a0   : > { %v1165_v26 = vpop.eup %1164 }
 0x3a1   : > { %v652_v27 = vsel %vm569_vm2, %v1165_v26, 0.0 }
 0x3a2   : > { %653 = vadd.xlane.f32.xlu2 %v652_v27 }
 0x3ba   : > { %778 = vrot.lane.b32.xlu2 %v1682_v51, %s1443_s10 }
 0x415   : > { %v654_v28 = vpop.xlane.xlu2 %653 }
 0x416   : > { %1166 = vrcp.f32 %v654_v28  ;;  %v666_v35 = vand.u32 2147483648, %v654_v28  ;;  %v664_v37 = vand.u32 2147483647, %v654_v28  ;;  %vm660_vm8 = vweird.f32 %v654_v28 }
 0x418   : > { %v667_v39 = vor.u32 1.1754944e-38, %v666_v35  ;;  %vm665_vm10 = vcmp.eq.f32.partialorder %v664_v37, 8.507059e+37 }
 0x41c   : > { %v1167_v30 = vpop.eup %1166 }
 0x41d   : > { %v656_v31 = vmul.f32 %v1167_v30, %v654_v28  ;;  %v779_v32 = vpop.permute.xlu2 %778  ;;  %vm661_vm7 = vweird.f32 %v1167_v30 }
 0x41e   : > { %1060 = vmatpush.xpose.msk.msrb.mxu1 %vm541_vm0, %v779_v32  ;;  %vm662_vm9 = vmor %vm660_vm8, %vm661_vm7 }
 0x41f   : > { %v657_v33 = vsub.f32 1.0, %v656_v31 }
 0x421   : > { %v658_v36 = vmul.f32 %v1167_v30, %v657_v33  ;;  %1061 = vmatmul.msk.f32.vlgmr.msrb.gmra.mxu1 %vm541_vm0, %v777_v34 }
 0x423   : > { %v659_v38 = vadd.f32 %v1167_v30, %v658_v36 }
 0x425   : > { %v663_v40 = vsel %vm662_vm9, %v1167_v30, %v659_v38 }
 0x426   : > { %v668_v41 = vsel %vm665_vm10, %v667_v39, %v663_v40 }
 0x427   : > { %v669_v42 = vmul.f32 %v1165_v26, %v668_v41 }
 0x429   : > { %1056 = vmatmul.msk.f32.vlgmr.msrb.gmra.mxu3 %vm569_vm2, %v669_v42 }
 0x431   : > { %1058 = vmatmul.msk.f32.vlgmr.msra.gmra.mxu3 %vm541_vm0, %v698_v29 }
 0x49e   : > { %v801_v43 = vpop.f32.mrf.mxu1 }
 0x49f   : > { %v804_v44 = vsel %vm540_vm1, %v801_v43, -1e+30 }
 0x4a0   : > { %v805_v45 = vsel %vm569_vm2, %v804_v44, -inf }
 0x4a1   : > { %806 = vmax.xlane.f32.xlu0 %v805_v45 }
 0x4ac   : > { %v694_v46 = vpop.f32.mrf.mxu3 }
 0x4b4   : > { %v722_v47 = vpop.f32.mrf.mxu3 }
 0x4b5   : > { %v725_v48 = vsel %vm540_vm1, %v722_v47, -1e+30 }
 0x4b6   : > { %v726_v49 = vsel %vm569_vm2, %v725_v48, -inf }
 0x4b7   : > { %727 = vmax.xlane.f32.xlu1 %v726_v49 }
 0x4d0   : > { %750 = vrot.lane.b32.xlu1 %v1695_v55, %s1442_s18 }
 0x514   : > { %v807_v50 = vpop.xlane.xlu0 %806 }
 0x515   : > { %v808_v51 = vsub.f32 %v804_v44, %v807_v50 }
 0x517   : > { %v809_v52 = vmul.f32 1.442695, %v808_v51 }
 0x519   : > { %1168 = vpow2.f32 %v809_v52 }
 0x51f   : > { %v1169_v53 = vpop.eup %1168 }
 0x520   : > { %v811_v54 = vsel %vm569_vm2, %v1169_v53, 0.0 }
 0x521   : > { %812 = vadd.xlane.f32.xlu2 %v811_v54 }
 0x52a   : > { %v728_v56 = vpop.xlane.xlu1 %727 }
 0x52b   : > { %v729_v57 = vsub.f32 %v725_v48, %v728_v56 }
 0x52d   : > { %v730_v60 = vmul.f32 1.442695, %v729_v57 }
 0x52f   : > { %1170 = vpow2.f32 %v730_v60 }
 0x535   : > { %v1171_v58 = vpop.eup %1170 }
 0x536   : > { %v732_v59 = vsel %vm569_vm2, %v1171_v58, 0.0 }
 0x537   : > { %733 = vadd.xlane.f32.xlu0 %v732_v59 }
 0x539   : > { %829 = vrot.lane.b32.xlu2 %v1695_v55, %s1443_s10 }
 0x542   : > { %v751_v61 = vpop.permute.xlu1 %750 }
 0x543   : > { %771 = vmatpush.msrb.mxu0 %v751_v61 }
 0x54b   : > { %856 = vrot.lane.b32.xlu0 %v694_v46, %s1443_s10 }
 0x594   : > { %v813_v62 = vpop.xlane.xlu2 %812 }
 0x595   : > { %1172 = vrcp.f32 %v813_v62  ;;  %v825_v3 = vand.u32 2147483648, %v813_v62  ;;  %v823_v5 = vand.u32 2147483647, %v813_v62  ;;  %vm819_vm12 = vweird.f32 %v813_v62 }
 0x597   : > { %v826_v7 = vor.u32 1.1754944e-38, %v825_v3  ;;  %vm824_vm14 = vcmp.eq.f32.partialorder %v823_v5, 8.507059e+37 }
 0x59b   : > { %v1173_v63 = vpop.eup %1172 }
 0x59c   : > { %v815_v0 = vmul.f32 %v1173_v63, %v813_v62  ;;  %v830_v1 = vpop.permute.xlu2 %829  ;;  %vm820_vm11 = vweird.f32 %v1173_v63 }
 0x59d   : > { %850 = vmatpush.msrb.mxu2 %v830_v1  ;;  %vm821_vm13 = vmor %vm819_vm12, %vm820_vm11 }
 0x59e   : > { %v816_v2 = vsub.f32 1.0, %v815_v0 }
 0x5a0   : > { %v817_v4 = vmul.f32 %v1173_v63, %v816_v2 }
 0x5a2   : > { %v818_v6 = vadd.f32 %v1173_v63, %v817_v4 }
 0x5a4   : > { %v822_v55 = vsel %vm821_vm13, %v1173_v63, %v818_v6 }
 0x5a5   : > { %v827_v8 = vsel %vm824_vm14, %v826_v7, %v822_v55 }
 0x5a6   : > { %v828_v9 = vmul.f32 %v1169_v53, %v827_v8 }
 0x5a8   : > { %1062 = vmatmul.msk.f32.vlgmr.msrb.gmra.mxu2 %vm569_vm2, %v828_v9 }
 0x5aa   : > { %v734_v10 = vpop.xlane.xlu0 %733 }
 0x5ab   : > { %1174 = vrcp.f32 %v734_v10  ;;  %v746_v14 = vand.u32 2147483648, %v734_v10  ;;  %v744_v16 = vand.u32 2147483647, %v734_v10  ;;  %vm740_vm1 = vweird.f32 %v734_v10 }
 0x5ad   : > { %v747_v18 = vor.u32 1.1754944e-38, %v746_v14  ;;  %vm745_vm4 = vcmp.eq.f32.partialorder %v744_v16, 8.507059e+37 }
 0x5b1   : > { %v1175_v11 = vpop.eup %1174 }
 0x5b2   : > { %v736_v12 = vmul.f32 %v1175_v11, %v734_v10  ;;  %vm741_vm15 = vweird.f32 %v1175_v11 }
 0x5b3   : > { %vm742_vm3 = vmor %vm740_vm1, %vm741_vm15 }
 0x5b4   : > { %v737_v13 = vsub.f32 1.0, %v736_v12 }
 0x5b6   : > { %v738_v15 = vmul.f32 %v1175_v11, %v737_v13 }
 0x5b8   : > { %v739_v17 = vadd.f32 %v1175_v11, %v738_v15 }
 0x5ba   : > { %v743_v20 = vsel %vm742_vm3, %v1175_v11, %v739_v17 }
 0x5bb   : > { %v748_v21 = vsel %vm745_vm4, %v747_v18, %v743_v20 }
 0x5bc   : > { %v749_v22 = vmul.f32 %v1171_v58, %v748_v21 }
 0x5bd   : > { %v857_v25 = vpop.permute.xlu0 %856 }
 0x5be   : > { %1059 = vmatmul.msk.f32.vlgmr.msrb.gmra.mxu0 %vm569_vm2, %v749_v22  ;;  %vm870_vm2 = vcmask 785408   ;;  %v867_v27 = vsel %vm541_vm0, %v1717_v19, %v857_v25 }
 0x62b   : > { %v852_v23 = vpop.f32.mrf.mxu2 }
 0x62c   : > { %864 = vrot.lane.b32.xlu0 %v852_v23, %s1441_s20 }
 0x63b   : > { %v773_v24 = vpop.f32.mrf.mxu0 }
 0x63c   : > { %860 = vrot.lane.b32.xlu2 %v773_v24, %s1442_s18 }
 0x696   : > { %v861_v26 = vpop.permute.xlu2 %860 }
 0x697   : > { %v869_v28 = vsel %vm868_vm5, %v867_v27, %v861_v26 }
 0x69e   : > { %v865_v29 = vpop.permute.xlu0 %864 }
 0x69f   : > { %v871_v30 = vsel %vm870_vm2, %v869_v28, %v865_v29 }
 0x6a0   : > { %872 = vst [vmem:[%s420_s14] sm:$0xff] %v871_v30 }
 0x6a1   : > { %1383 = shalt.err (!%p1380_p11)
}
 0x6a2   : > { %1085 = dma.vmem_to_hbm [thread:$0]  (%p1553_p0), %s887_s3, 128, %s889_s11, %s874_s8  }
 0x6a3 PF: > { %s1826_s28 = sld [smem:[#allocation19_spill]] }
 0x6a4   : > { %s1828_s20 = sld [smem:[#allocation20_spill]] }
 0x6a9   : > { %s900_s23 = sand.u32 1, %s1826_s28  }
 0x6aa   : > { %p1829_p12 = scmp.ge.s32.totalorder %s1828_s20, 2  ;;  %s901_s17 = scalar_lea.sflag [#allocation4], %s900_s23 }
 0x6ac   : > { %p1108_p3 = pnand %p1829_p12, %p1559_p5 }
 0x6ae   : > { %p1109_p8 = pneg %p1108_p3 }
 0x6b0   : > { %1417 = dma.done.wait (%p1109_p8), %s901_s17, 128  }
 0x6b1   : > { %1419 = vsyncadd (%p1109_p8), %s901_s17, 4294967168  ;;  %s1830_s27 = sld [smem:[#allocation21_spill]]  ;;  %s1832_s24 = smov %s1426_s25 }
 0x6b2   : > { %s1831_s18 = sld [smem:[#allocation22_spill]]  ;;  %s1833_s25 = smov %s1430_s26 }
 0x6b7   : > { %p25_p9 = scmp.ge.s32.totalorder %s1830_s27, 4  }
 0x6b8   : > { %s1834_s26 = smov %s1831_s18 }
 0x6b9   :  { %27 = sbr.rel (!%p25_p9) target bundleno = 12 (0xc), region = 129 }
 0x6be   :  { %907 = vsyncpa [#allocation3], 1 }
 0x6bf   :  { %909 = vsyncpa [#allocation3 + $0x1], 1 }
 0x6c0   :  { %910 = vsyncpa [#allocation6], 1 }
 0x6c1   :  { %912 = vsyncpa [#allocation6 + $0x1], 1 }
 0x6c2   :  { %913 = vsyncpa [#allocation9], 1 }
 0x6c3   :  { %914 = vsyncpa [#allocation12], 1 }
 0x6c4   :  { %915 = vsyncpa [#allocation4], 1 }
 0x6c5   :  { %917 = vsyncpa [#allocation4 + $0x1], 1 }

</bundles_post_ra>
